<compile_context>
chip_gen: v7x
topology: tpu7x:2x2x1
jax: 0.10.0
libtpu: 0.0.40
codegen_flags: <defaults>
</compile_context>

<pallas_src>
import jax
import jax.numpy as jnp
from jax import lax
from jax.experimental import pallas as pl
from jax.experimental.pallas import tpu as pltpu


def _pick_batch_block(B):
    """TB: multiple of 8 with >=2 blocks when possible, else the full batch."""
    if B <= 8 or B % 8 != 0:
        return B                      # single block; block dims == array dims
    tb = 8
    for cand in (16, 32, 64, 128):
        if B % cand == 0 and B // cand >= 2:
            tb = cand
    return tb


def _make_kernel(TB, S, E, C, unroll_s):
    def kernel(ids_ref, table_ref, w_ref, bias_ref, out_ref, pooled_ref):
        blk = pl.program_id(0)
        base = blk * (TB * S)                 # flat offset of this batch block
        inv_s = jnp.float32(1.0 / S)

        # Mean-pool over S for each of the TB batch rows in this block.
        # Accumulation stays in registers; one (1, E) store per batch row.
        def pool_one_row(b, carry):
            def add_token(s, acc):
                tok = ids_ref[base + b * S + s]            # SMEM scalar read
                return acc + table_ref[pl.ds(tok, 1), :]   # (1, E) row gather
            row = lax.fori_loop(0, S, add_token,
                                jnp.zeros((1, E), jnp.float32),
                                unroll=unroll_s)
            pooled_ref[pl.ds(b, 1), :] = row * inv_s
            return carry

        lax.fori_loop(0, TB, pool_one_row, 0)

        # Batched classifier head: one (TB,E) x (E,C) MXU matmul per block,
        # W kept in its native nn.Linear (C, E) layout (contract over E).
        pooled = pooled_ref[...]                               # (TB, E)
        logits = lax.dot_general(
            pooled, w_ref[...],
            dimension_numbers=(((1,), (1,)), ((), ())),
            preferred_element_type=jnp.float32)                # (TB, C)
        out_ref[...] = (logits + bias_ref[...]).astype(out_ref.dtype)

    return kernel


def logistic_regression(input_ids, embedding, weight, bias):
    """input_ids: (B, S) int; embedding: (V, E); weight: (C, E); bias: (C,)."""
    B, S = input_ids.shape
    V, E = embedding.shape
    C = weight.shape[0]

    TB = _pick_batch_block(B)
    n_blocks = B // TB

    # Clamp out-of-range ids (a bad id would silently corrupt the mean) and
    # flatten to 1-D for a compact SMEM scalar-prefetch footprint.
    ids_flat = jnp.clip(input_ids.astype(jnp.int32), 0, V - 1).reshape(-1)
    bias2 = bias.reshape(1, C).astype(jnp.float32)

    kernel = _make_kernel(TB, S, E, C, unroll_s=bool(S <= 16))

    # Resident footprint: table + weights + bias + pooled scratch + (double
    # buffered) output blocks, plus slack.  Capped at 64 MiB (v7x VMEM).
    vmem_needed = 4 * (V * E + C * E + C + TB * E + 2 * TB * C) + (1 << 20)
    vmem_limit = int(min(max(2 * vmem_needed, 16 * 1024 * 1024),
                         64 * 1024 * 1024))

    grid_spec = pltpu.PrefetchScalarGridSpec(
        num_scalar_prefetch=1,            # flattened input_ids -> SMEM
        grid=(n_blocks,),
        in_specs=[
            # Whole embedding table resident in VMEM (constant index_map =>
            # one bulk DMA, rows de-duplicated for free).
            pl.BlockSpec((V, E), lambda i, ids: (0, 0)),
            pl.BlockSpec((C, E), lambda i, ids: (0, 0)),   # classifier weight
            pl.BlockSpec((1, C), lambda i, ids: (0, 0)),   # bias
        ],
        out_specs=pl.BlockSpec((TB, C), lambda i, ids: (i, 0)),
        scratch_shapes=[pltpu.VMEM((TB, E), jnp.float32)],  # pooled block
    )

    out = pl.pallas_call(
        kernel,
        out_shape=jax.ShapeDtypeStruct((B, C), jnp.float32),
        grid_spec=grid_spec,
        compiler_params=pltpu.CompilerParams(
            dimension_semantics=("parallel",),
            vmem_limit_bytes=vmem_limit),
    )(ids_flat,
      embedding.astype(jnp.float32),
      weight.astype(jnp.float32),
      bias2)

    return out


def reference(input_ids, embedding, weight, bias):
    embedded = embedding[input_ids]          # (B, S, E)
    pooled = embedded.mean(axis=1)           # (B, E)
    return pooled @ weight.T + bias          # (B, C)


if __name__ == "__main__":
    # Small, deterministic synthetic setup.
    vocab_size, embed_dim, num_classes = 128, 32, 4
    batch, seq = 2, 8

    key = jax.random.PRNGKey(0)
    k_ids, k_emb, k_w, k_b = jax.random.split(key, 4)

    input_ids = jax.random.randint(k_ids, (batch, seq), 0, vocab_size,
                                   dtype=jnp.int32)
    embedding = jax.random.normal(k_emb, (vocab_size, embed_dim),
                                  dtype=jnp.float32)
    # nn.Linear(embed_dim, num_classes): weight (C, E), bias (C,)
    weight = jax.random.normal(k_w, (num_classes, embed_dim),
                               dtype=jnp.float32) * 0.1
    bias = jax.random.normal(k_b, (num_classes,), dtype=jnp.float32) * 0.1

    logits = logistic_regression(input_ids, embedding, weight, bias)
    logits = jax.block_until_ready(logits)

    ref = reference(input_ids, embedding, weight, bias)
    assert logits.shape == (batch, num_classes)
    err = jnp.max(jnp.abs(logits - ref))
    assert jnp.allclose(logits, ref, atol=1e-4, rtol=1e-4), f"max err {err}"

    print("KERNEL_OK")
</pallas_src>

<mosaic_0001>
module attributes {stable_mosaic.version = 11 : i64} {
  func.func @kernel(%arg0: i32, %arg1: memref<16xi32, #tpu.memory_space<smem>>, %arg2: memref<128x32xf32, #tpu.memory_space<vmem>>, %arg3: memref<4x32xf32, #tpu.memory_space<vmem>>, %arg4: memref<1x4xf32, #tpu.memory_space<vmem>>, %arg5: memref<2x4xf32, #tpu.memory_space<vmem>>, %arg6: memref<2x32xf32, #tpu.memory_space<vmem>>) attributes {dimension_semantics = [#tpu.dimension_semantics<parallel>], iteration_bounds = array<i64: 1>, scalar_prefetch = 1 : i64, scratch_operands = 1 : i64, tpu.core_type = #tpu.core_type<tc>, window_params = [{pipeline_mode = #tpu.pipeline_mode<synchronous>, transform_indices = @transform_0, window_bounds = array<i64: 128, 32>}, {pipeline_mode = #tpu.pipeline_mode<synchronous>, transform_indices = @transform_1, window_bounds = array<i64: 4, 32>}, {pipeline_mode = #tpu.pipeline_mode<synchronous>, transform_indices = @transform_2, window_bounds = array<i64: 1, 4>}, {transform_indices = @transform_3, window_bounds = array<i64: 2, 4>}]} {
    %c16_i32 = arith.constant 16 : i32
    %0 = arith.muli %arg0, %c16_i32 : i32
    %cst = arith.constant 1.250000e-01 : f32
    %c0_i32 = arith.constant 0 : i32
    %c2_i32 = arith.constant 2 : i32
    %1 = arith.addi %c0_i32, %c2_i32 : i32
    %c1_i32 = arith.constant 1 : i32
    scf.for %arg7 = %c0_i32 to %1 step %c1_i32  : i32 {
      %cst_9 = arith.constant 0.000000e+00 : f32
      %9 = vector.broadcast %cst_9 : f32 to vector<1x32xf32>
      %c0_i32_10 = arith.constant 0 : i32
      %c8_i32 = arith.constant 8 : i32
      %10 = arith.muli %arg7, %c8_i32 : i32
      %11 = arith.addi %0, %10 : i32
      %12 = arith.addi %11, %c0_i32_10 : i32
      %13 = arith.index_cast %12 : i32 to index
      %14 = memref.load %arg1[%13] : memref<16xi32, #tpu.memory_space<smem>>
      %15 = arith.index_cast %14 : i32 to index
      %c0_11 = arith.constant 0 : index
      %16 = vector.load %arg2[%15, %c0_11] : memref<128x32xf32, #tpu.memory_space<vmem>>, vector<1x32xf32>
      %17 = arith.addf %9, %16 : vector<1x32xf32>
      %c1_i32_12 = arith.constant 1 : i32
      %c8_i32_13 = arith.constant 8 : i32
      %18 = arith.muli %arg7, %c8_i32_13 : i32
      %19 = arith.addi %0, %18 : i32
      %20 = arith.addi %19, %c1_i32_12 : i32
      %21 = arith.index_cast %20 : i32 to index
      %22 = memref.load %arg1[%21] : memref<16xi32, #tpu.memory_space<smem>>
      %23 = arith.index_cast %22 : i32 to index
      %c0_14 = arith.constant 0 : index
      %24 = vector.load %arg2[%23, %c0_14] : memref<128x32xf32, #tpu.memory_space<vmem>>, vector<1x32xf32>
      %25 = arith.addf %17, %24 : vector<1x32xf32>
      %c2_i32_15 = arith.constant 2 : i32
      %c8_i32_16 = arith.constant 8 : i32
      %26 = arith.muli %arg7, %c8_i32_16 : i32
      %27 = arith.addi %0, %26 : i32
      %28 = arith.addi %27, %c2_i32_15 : i32
      %29 = arith.index_cast %28 : i32 to index
      %30 = memref.load %arg1[%29] : memref<16xi32, #tpu.memory_space<smem>>
      %31 = arith.index_cast %30 : i32 to index
      %c0_17 = arith.constant 0 : index
      %32 = vector.load %arg2[%31, %c0_17] : memref<128x32xf32, #tpu.memory_space<vmem>>, vector<1x32xf32>
      %33 = arith.addf %25, %32 : vector<1x32xf32>
      %c3_i32 = arith.constant 3 : i32
      %c8_i32_18 = arith.constant 8 : i32
      %34 = arith.muli %arg7, %c8_i32_18 : i32
      %35 = arith.addi %0, %34 : i32
      %36 = arith.addi %35, %c3_i32 : i32
      %37 = arith.index_cast %36 : i32 to index
      %38 = memref.load %arg1[%37] : memref<16xi32, #tpu.memory_space<smem>>
      %39 = arith.index_cast %38 : i32 to index
      %c0_19 = arith.constant 0 : index
      %40 = vector.load %arg2[%39, %c0_19] : memref<128x32xf32, #tpu.memory_space<vmem>>, vector<1x32xf32>
      %41 = arith.addf %33, %40 : vector<1x32xf32>
      %c4_i32 = arith.constant 4 : i32
      %c8_i32_20 = arith.constant 8 : i32
      %42 = arith.muli %arg7, %c8_i32_20 : i32
      %43 = arith.addi %0, %42 : i32
      %44 = arith.addi %43, %c4_i32 : i32
      %45 = arith.index_cast %44 : i32 to index
      %46 = memref.load %arg1[%45] : memref<16xi32, #tpu.memory_space<smem>>
      %47 = arith.index_cast %46 : i32 to index
      %c0_21 = arith.constant 0 : index
      %48 = vector.load %arg2[%47, %c0_21] : memref<128x32xf32, #tpu.memory_space<vmem>>, vector<1x32xf32>
      %49 = arith.addf %41, %48 : vector<1x32xf32>
      %c5_i32 = arith.constant 5 : i32
      %c8_i32_22 = arith.constant 8 : i32
      %50 = arith.muli %arg7, %c8_i32_22 : i32
      %51 = arith.addi %0, %50 : i32
      %52 = arith.addi %51, %c5_i32 : i32
      %53 = arith.index_cast %52 : i32 to index
      %54 = memref.load %arg1[%53] : memref<16xi32, #tpu.memory_space<smem>>
      %55 = arith.index_cast %54 : i32 to index
      %c0_23 = arith.constant 0 : index
      %56 = vector.load %arg2[%55, %c0_23] : memref<128x32xf32, #tpu.memory_space<vmem>>, vector<1x32xf32>
      %57 = arith.addf %49, %56 : vector<1x32xf32>
      %c6_i32 = arith.constant 6 : i32
      %c8_i32_24 = arith.constant 8 : i32
      %58 = arith.muli %arg7, %c8_i32_24 : i32
      %59 = arith.addi %0, %58 : i32
      %60 = arith.addi %59, %c6_i32 : i32
      %61 = arith.index_cast %60 : i32 to index
      %62 = memref.load %arg1[%61] : memref<16xi32, #tpu.memory_space<smem>>
      %63 = arith.index_cast %62 : i32 to index
      %c0_25 = arith.constant 0 : index
      %64 = vector.load %arg2[%63, %c0_25] : memref<128x32xf32, #tpu.memory_space<vmem>>, vector<1x32xf32>
      %65 = arith.addf %57, %64 : vector<1x32xf32>
      %c7_i32 = arith.constant 7 : i32
      %c8_i32_26 = arith.constant 8 : i32
      %66 = arith.muli %arg7, %c8_i32_26 : i32
      %67 = arith.addi %0, %66 : i32
      %68 = arith.addi %67, %c7_i32 : i32
      %69 = arith.index_cast %68 : i32 to index
      %70 = memref.load %arg1[%69] : memref<16xi32, #tpu.memory_space<smem>>
      %71 = arith.index_cast %70 : i32 to index
      %c0_27 = arith.constant 0 : index
      %72 = vector.load %arg2[%71, %c0_27] : memref<128x32xf32, #tpu.memory_space<vmem>>, vector<1x32xf32>
      %73 = arith.addf %65, %72 : vector<1x32xf32>
      %c8_i32_28 = arith.constant 8 : i32
      %74 = vector.broadcast %cst : f32 to vector<1x32xf32>
      %75 = arith.mulf %73, %74 : vector<1x32xf32>
      %76 = arith.index_cast %arg7 : i32 to index
      %c0_29 = arith.constant 0 : index
      %77 = vector.load %arg6[%76, %c0_29] : memref<2x32xf32, #tpu.memory_space<vmem>>, vector<1x32xf32>
      tpu.vector_store %arg6[%76, %c0_29], %75 {strides = array<i32>} : memref<2x32xf32, #tpu.memory_space<vmem>>, vector<1x32xf32>,
    }
    %c2_i32_0 = arith.constant 2 : i32
    %c0 = arith.constant 0 : index
    %c0_1 = arith.constant 0 : index
    %2 = vector.load %arg6[%c0, %c0_1] : memref<2x32xf32, #tpu.memory_space<vmem>>, vector<2x32xf32>
    %c0_2 = arith.constant 0 : index
    %c0_3 = arith.constant 0 : index
    %3 = vector.load %arg3[%c0_2, %c0_3] : memref<4x32xf32, #tpu.memory_space<vmem>>, vector<4x32xf32>
    %cst_4 = arith.constant dense<0.000000e+00> : vector<2x4xf32>
    %4 = tpu.matmul %2, %3, %cst_4 {dimension_numbers = #tpu.dot_dimension_numbers<[1], [1], [0], [0], [0, 0, 1, 0], [], []>} : vector<2x32xf32>, vector<4x32xf32>, vector<2x4xf32> -> vector<2x4xf32>
    %c0_5 = arith.constant 0 : index
    %c0_6 = arith.constant 0 : index
    %5 = vector.load %arg4[%c0_5, %c0_6] : memref<1x4xf32, #tpu.memory_space<vmem>>, vector<1x4xf32>
    %6 = vector.broadcast %5 : vector<1x4xf32> to vector<2x4xf32>
    %7 = arith.addf %4, %6 : vector<2x4xf32>
    %c0_7 = arith.constant 0 : index
    %c0_8 = arith.constant 0 : index
    %8 = vector.load %arg5[%c0_7, %c0_8] : memref<2x4xf32, #tpu.memory_space<vmem>>, vector<2x4xf32>
    tpu.vector_store %arg5[%c0_7, %c0_8], %7 {strides = array<i32>} : memref<2x4xf32, #tpu.memory_space<vmem>>, vector<2x4xf32>,
    return
  }
  func.func @transform_0(%arg0: i32, %arg1: memref<16xi32, #tpu.memory_space<smem>>) -> (i32, i32) {
    %c0_i32 = arith.constant 0 : i32
    %c0_i32_0 = arith.constant 0 : i32
    %c0_i32_1 = arith.constant 0 : i32
    return %c0_i32, %c0_i32_0 : i32, i32
  }
  func.func @transform_1(%arg0: i32, %arg1: memref<16xi32, #tpu.memory_space<smem>>) -> (i32, i32) {
    %c0_i32 = arith.constant 0 : i32
    %c0_i32_0 = arith.constant 0 : i32
    %c0_i32_1 = arith.constant 0 : i32
    return %c0_i32, %c0_i32_0 : i32, i32
  }
  func.func @transform_2(%arg0: i32, %arg1: memref<16xi32, #tpu.memory_space<smem>>) -> (i32, i32) {
    %c0_i32 = arith.constant 0 : i32
    %c0_i32_0 = arith.constant 0 : i32
    %c0_i32_1 = arith.constant 0 : i32
    return %c0_i32, %c0_i32_0 : i32, i32
  }
  func.func @transform_3(%arg0: i32, %arg1: memref<16xi32, #tpu.memory_space<smem>>) -> (i32, i32) {
    %c0_i32 = arith.constant 0 : i32
    %c0_i32_0 = arith.constant 0 : i32
    return %arg0, %c0_i32 : i32, i32
  }
}

</mosaic_0001>

<bundles_post_ra>
// kernel: tpu_custom_call.1
= control target key start
LH: loop header
LB: loop body
LE: loop exit
PB: predicated region body
PF: predicated region fallthrough
CT: control target
= control target key end

     0   :  { %s343_s0 = inlined_call_operand.vmem [shape: s32[16], index: 0, kind: input, shape index: {}]   ;;  %s344_s1 = inlined_call_operand.vmem [shape: f32[128,32], index: 1, kind: input, shape index: {}]   ;;  %s345_s2 = inlined_call_operand.vmem [shape: f32[4,32], index: 2, kind: input, shape index: {}]   ;;  %s346_s3 = inlined_call_operand.vmem [shape: f32[1,4], index: 3, kind: input, shape index: {}]   ;;  %s347_s4 = inlined_call_operand.hbm [shape: f32[2,4], index: 4, kind: output, shape index: {}]  }
   0x1   :  { %s9_s17 = sshll.u32 %s343_s0, 4  ;;  %s10_s17 = int_to_ptr.vmem [resolvable:$true] %s9_s17 }
   0x2   :  { %s213_s18 = scalar_lea.vmem %s10_s17, 16  ;;  %p218_p1 = scmp.lt.s32.totalorder %s10_s17, %s10_s17 }
   0x3   :  { %p214_p0 = scmp.ne.s32.totalorder %s10_s17, %s213_s18  ;;  %p219_p2 = scmp.lt.s32.totalorder %s213_s18, %s213_s18 }
   0x5   :  { %p220_p3 = por %p219_p2, %p218_p1 }
   0x7   :  { %p221_p4 = pnand %p220_p3, %p214_p0 }
   0x9   :  { %224 = shalt.err (!%p221_p4)  }
   0xa   :  { %s259_s19 = smov [#allocation4]  }
   0xb   :  { %12 = dma.vmem_to_smem %s10_s17, 16, %s259_s19, [#allocation3] }
   0xc   :  { %251 = dma.done.wait [#allocation3], 16 }
   0xd   :  { %252 = vsyncadd [#allocation3], 4294967280 }
   0xe   :  { %14 = sfence }
   0xf   :  { %15 = vsyncpa [#allocation6], 0  ;;  %s291_s20 = smov 0  }
  0x10 LB: > { %s190_s0 = sshll.u32 %s257_s20, 3  ;;  %vm72_vm0 = vcmask 253952   ;;  %s257_s20 = sphi %s291_s20, %s28_s20  }
  0x11   : > { %s31_s21 = sld [smem:[#allocation4 + %s190_s0]]  ;;  %s35_s22 = sadd.s32 1, %s190_s0 }
  0x12   : > { %s36_s23 = sld [smem:[#allocation4 + %s35_s22]]  ;;  %s40_s24 = sadd.s32 2, %s190_s0 }
  0x13   : > { %s41_s25 = sld [smem:[#allocation4 + %s40_s24]]  ;;  %s45_s26 = sadd.s32 3, %s190_s0 }
  0x14   : > { %s46_s27 = sld [smem:[#allocation4 + %s45_s26]]  ;;  %s50_s28 = sadd.s32 4, %s190_s0 }
  0x15   : > { %s51_s29 = sld [smem:[#allocation4 + %s50_s28]]  ;;  %s55_s30 = sadd.s32 5, %s190_s0 }
  0x16   : > { %s56_s5 = sld [smem:[#allocation4 + %s55_s30]]  ;;  %s60_s6 = sadd.s32 6, %s190_s0 }
  0x17   : > { %s32_s9 = scalar_lea.vmem %s344_s1, %s31_s21  ;;  %s61_s10 = sld [smem:[#allocation4 + %s60_s6]] }
  0x18   : > { %v33_v0 = vld [vmem:[%s32_s9] sm:$0x1]  ;;  %s37_s13 = scalar_lea.vmem %s344_s1, %s36_s23  ;;  %s65_s14 = sadd.s32 7, %s190_s0 }
  0x19   : > { %v38_v1 = vld [vmem:[%s37_s13] sm:$0x1]  ;;  %s42_s17 = scalar_lea.vmem %s344_s1, %s41_s25  ;;  %s66_s18 = sld [smem:[#allocation4 + %s65_s14]] }
  0x1a   : > { %v39_v2 = vadd.f32 %v38_v1, %v33_v0  ;;  %v43_v3 = vld [vmem:[%s42_s17] sm:$0x1]  ;;  %s47_s24 = scalar_lea.vmem %s344_s1, %s46_s27 }
  0x1b   : > { %v48_v4 = vld [vmem:[%s47_s24] sm:$0x1]  ;;  %s52_s28 = scalar_lea.vmem %s344_s1, %s51_s29  ;;  %s71_s29 = scalar_lea.vmem [#allocation2], %s257_s20 }
  0x1c   : > { %v44_v5 = vadd.f32 %v43_v3, %v39_v2  ;;  %s57_s30 = scalar_lea.vmem %s344_s1, %s56_s5  ;;  %v53_v6 = vld [vmem:[%s52_s28] sm:$0x1]  ;;  %s28_s20 = sadd.s32 1, %s257_s20  }
  0x1d   : > { %s62_s7 = scalar_lea.vmem %s344_s1, %s61_s10  ;;  %v58_v8 = vld [vmem:[%s57_s30] sm:$0x1]  ;;  %p25_p5 = scmp.ge.s32.totalorder %s28_s20, 2  }
  0x1e   : > { %v49_v7 = vadd.f32 %v48_v4, %v44_v5  ;;  %v63_v10 = vld [vmem:[%s62_s7] sm:$0x1]  ;;  %vm83_vm1 = vcmask (%p25_p5), 261120   ;;  %v260_v17 = vmov (%p25_p5), 0.0   ;;  %vm261_vm2 = vmmov (%p25_p5), 0   ;;  %s262_s13 = smov (%p25_p5), [#allocation5]  }
  0x1f   : > { %s67_s9 = scalar_lea.vmem %s344_s1, %s66_s18  ;;  %v75_v16 = vld [vmem:[%s345_s2] sm:$0xf] (%p25_p5)  ;;  %196 = vmatprep.subr.mxu0 (%p25_p5), %v260_v17  ;;  %198 = vmatprep.mubr.msk.f32.mxu0 (%p25_p5), %vm261_vm2, %v260_v17  ;;  %s168_s14 = sshll.u32 (%p25_p5), %s262_s13, 4  ;;  %vm160_vm3 = vcmask (%p25_p5), 25600   ;;  %s169_s14 = int_to_ptr.vmem [resolvable:$true] %s168_s14 }
  0x20   : > { %v54_v9 = vadd.f32 %v53_v6, %v49_v7  ;;  %v68_v12 = vld [vmem:[%s67_s9] sm:$0x1]  ;;  %197 = vmatpush3.xpose.msk.msra.mxu0 (%p25_p5), %vm83_vm1, %v75_v16  ;;  %s225_s1 = scalar_lea.vmem (%p25_p5), %s169_s14, 32  ;;  %p230_p7 = scmp.lt.s32.totalorder (%p25_p5), %s169_s14, %s169_s14 }
  0x21   :  { %v191_v19 = vld [vmem:[%s346_s3] ss:$0 sm:$0xff] (%p25_p5)  ;;  %p226_p6 = scmp.ne.s32.totalorder (%p25_p5), %s169_s14, %s225_s1  ;;  %p231_p8 = scmp.lt.s32.totalorder (%p25_p5), %s225_s1, %s225_s1 }
  0x22   : > { %v59_v11 = vadd.f32 %v58_v8, %v54_v9 }
  0x23   :  { %p232_p9 = por (%p25_p5), %p231_p8, %p230_p7 }
  0x24   : > { %v64_v13 = vadd.f32 %v63_v10, %v59_v11  ;;  %27 = sbr.rel (!%p25_p5) target bundleno = 16 (0x10), region = 48 }
  0x25   :  { %p233_p10 = pnand (%p25_p5), %p232_p9, %p226_p6 }
  0x26   : > { %v69_v14 = vadd.f32 %v68_v12, %v64_v13 }
  0x28   : > { %v70_v15 = vmul.f32 0.125, %v69_v14 }
  0x2a   : > { %73 = vst.msk [vmem:[%s71_s29] sm:$0x1] %vm72_vm0, %v70_v15 }
  0x31   :  { %v74_v18 = vld [vmem:[#allocation2] sm:$0x3] }
  0x32   :  { %199 = vmatmul.mubr.msk.f32.vlgmr.msra.gmra.mrb[0].mxu0 %vm83_vm1, %v74_v18 }
 0x105   :  { %v156_v20 = vpop.f32.mrb[0].mxu0 }
 0x106   :  { %v157_v21 = vadd.f32 %v191_v19, %v156_v20  ;;  %v200_v22 = vpop.f32.mrb[1].mxu0 }
 0x108   :  { %161 = vst.msk [vmem:[#allocation5] sm:$0x3] %vm160_vm3, %v157_v21 }
 0x109   :  { %236 = shalt.err (!%p233_p10)
}
 0x10a   :  { %s237_s15 = scalar_lea.hbm %s347_s4, 32 }
 0x10b   :  { %p238_p11 = scmp.ne.s32.totalorder %s347_s4, %s237_s15  ;;  %p241_p12 = scmp.lt.u32.totalorder %s237_s15, %s347_s4 }
 0x10d   :  { %p243_p13 = pnand %p241_p12, %p238_p11 }
 0x10f   :  { %246 = shalt.err (!%p243_p13)
}
 0x110   :  { %171 = dma.vmem_to_hbm [thread:$0]  %s169_s14, 32, %s347_s4, [#allocation6]  }
 0x111   :  { %253 = dma.done.wait [#allocation6], 32  }
 0x112   :  { %254 = vsyncadd [#allocation6], 4294967264 }
 0x113   :  { %175 = vsyncpa [#allocation6], 1 }

</bundles_post_ra>
